<compile_context>
chip_gen: v7x
topology: tpu7x:2x2x1
jax: 0.10.0
libtpu: 0.0.40
codegen_flags: <defaults>
</compile_context>

<pallas_src>
import functools

import jax
import jax.numpy as jnp
from jax import lax
from jax.experimental import pallas as pl
from jax.experimental.pallas import tpu as pltpu


def bilstm_kernel(x2d_ref,    # (T*B_pad, E) time-major, batch-padded embeddings
                  wcat_ref,   # (E, 8H)  [W_ih_f^T | W_ih_b^T]
                  bcat_ref,   # (1, 8H)  [b_ih_f+b_hh_f | b_ih_b+b_hh_b]
                  whh_f_ref,  # (H, 4H)  forward W_hh^T
                  wout_ref,   # (2H, L)  hidden2label W^T
                  bout_ref,   # (1, L)
                  out_ref):   # (B_pad, L) log-probs
    TB, E = x2d_ref.shape
    B = out_ref.shape[0]                       # padded batch (multiple of 8)
    T = TB // B
    H = whh_f_ref.shape[0]

    # ---- Single-tanh gate activation ---------------------------------------
    # PyTorch gate order [i, f, g, o]: tanh on the "g" block, sigmoid on the
    # rest.  sigmoid(x) == 0.5*tanh(0.5*x) + 0.5, so ONE EUP tanh pass covers
    # the whole (B, 4H) tile; masked scale/offset vectors are built once and
    # reused by every step.
    lane = lax.broadcasted_iota(jnp.int32, (B, 4 * H), 1)
    is_g_lane = (lane >= 2 * H) & (lane < 3 * H)
    scale = jnp.where(is_g_lane, 1.0, 0.5).astype(jnp.float32)  # pre & post
    offset = jnp.where(is_g_lane, 0.0, 0.5).astype(jnp.float32)

    def activate(g):
        return jnp.tanh(g * scale) * scale + offset

    # ---- Fused input projection (both directions, all T steps) -------------
    # One MXU matmul with N = 8H = 256 (full v6e/v7x array width); biases
    # folded in once instead of per step.
    g_all = (jnp.dot(x2d_ref[...], wcat_ref[...],
                     preferred_element_type=jnp.float32)
             + bcat_ref[...])                               # (T*B, 8H)

    whh_f = whh_f_ref[...]

    # ---- Forward recurrence (fully unrolled, T static) ---------------------
    h = jnp.zeros((B, H), jnp.float32)
    c = jnp.zeros((B, H), jnp.float32)
    for t in range(T):
        g = g_all[t * B:(t + 1) * B, 0:4 * H]               # aligned static slice
        if t > 0:
            g = g + jnp.dot(h, whh_f, preferred_element_type=jnp.float32)
        act = activate(g)
        i = act[:, 0 * H:1 * H]
        f = act[:, 1 * H:2 * H]
        gg = act[:, 2 * H:3 * H]
        o = act[:, 3 * H:4 * H]
        c = i * gg if t == 0 else f * c + i * gg            # t=0: c_prev == 0
        h = o * jnp.tanh(c)
    h_f = h

    # ---- Backward direction: single cell step at t = T-1 -------------------
    # lstm_out[-1] only uses the backward hidden at t = T-1, i.e. the backward
    # LSTM's *first* step from the zero initial state: h @ W_hh == 0 and
    # f * c_prev == 0, so one cell step is exact.
    # NOTE: only valid while the classifier reads lstm_out[-1]; a variant that
    # reads the final backward hidden h_n would need the full reverse scan.
    gb = g_all[(T - 1) * B:T * B, 4 * H:8 * H]              # (B, 4H), aligned
    act_b = activate(gb)
    c_b = act_b[:, 0 * H:1 * H] * act_b[:, 2 * H:3 * H]
    h_b = act_b[:, 3 * H:4 * H] * jnp.tanh(c_b)

    # ---- hidden2label + log_softmax ----------------------------------------
    hcat = jnp.concatenate([h_f, h_b], axis=1)              # (B, 2H)
    y = (jnp.dot(hcat, wout_ref[...], preferred_element_type=jnp.float32)
         + bout_ref[...])                                   # (B, L)
    m = jnp.max(y, axis=-1, keepdims=True)
    lse = jnp.log(jnp.sum(jnp.exp(y - m), axis=-1, keepdims=True)) + m
    out_ref[...] = y - lse


def bilstm_sentiment_forward(sentence, params):
    """sentence: (T, B) int32 token ids (time-major, like the PyTorch module)."""
    emb = params["embedding"]                    # (V, E)
    x = emb[sentence].astype(jnp.float32)        # (T, B, E) -- gather glue in JAX

    T, B, E = x.shape
    H = params["whh_f"].shape[1]
    L = params["wout"].shape[0]

    # Pad batch to the f32 sublane multiple so every per-step gate slice in
    # the kernel is a full, offset-0 vreg tile (zero-cost static slices).
    B_pad = ((B + 7) // 8) * 8
    if B_pad != B:
        x = jnp.pad(x, ((0, 0), (0, B_pad - B), (0, 0)))
    x2d = x.reshape(T * B_pad, E)                # flatten in the wrapper (free)

    # Weight prep below constant-folds (params bound via functools.partial);
    # if params ever become traced, hoist this prep out of the per-call jit.
    wcat = jnp.concatenate([params["wih_f"].T, params["wih_b"].T], axis=1)  # (E, 8H)
    bcat = jnp.concatenate([params["bih_f"] + params["bhh_f"],
                            params["bih_b"] + params["bhh_b"]]).reshape(1, 8 * H)
    whh_f_t = params["whh_f"].T                  # (H, 4H)
    wout_t = params["wout"].T                    # (2H, L)
    bout = params["bout"].reshape(1, L)

    # TODO(synk): at production sizes, add a parallel batch-tile grid axis
    # (dimension_semantics=("parallel",) for v7x's 2 TCs), chunk the input
    # projection over T for v7x's 64 MiB VMEM (explicit vmem_limit_bytes), and
    # cast MXU operands to bf16 (loosening the test tolerance); at this toy
    # size a single grid-less f32 call is latency-optimal.
    vmem = pl.BlockSpec(memory_space=pltpu.MemorySpace.VMEM)
    out = pl.pallas_call(
        bilstm_kernel,
        out_shape=jax.ShapeDtypeStruct((B_pad, L), jnp.float32),
        in_specs=[vmem] * 6,
        out_specs=vmem,
    )(x2d, wcat, bcat, whh_f_t, wout_t, bout)
    return out[:B]


def _ref_forward(sentence, params):
    """Pure-JAX reference mirroring the PyTorch module semantics."""
    x = params["embedding"][sentence]            # (T, B, E)
    T, B, E = x.shape
    H = params["whh_f"].shape[1]

    def run_dir(xs, wih, whh, bih, bhh):
        def step(carry, xt):
            h, c = carry
            g = xt @ wih.T + bih + h @ whh.T + bhh
            i = jax.nn.sigmoid(g[:, :H])
            f = jax.nn.sigmoid(g[:, H:2 * H])
            gg = jnp.tanh(g[:, 2 * H:3 * H])
            o = jax.nn.sigmoid(g[:, 3 * H:])
            c = f * c + i * gg
            h = o * jnp.tanh(c)
            return (h, c), h
        init = (jnp.zeros((B, H)), jnp.zeros((B, H)))
        _, hs = lax.scan(step, init, xs)
        return hs

    hs_f = run_dir(x, params["wih_f"], params["whh_f"],
                   params["bih_f"], params["bhh_f"])
    hs_b = run_dir(x[::-1], params["wih_b"], params["whh_b"],
                   params["bih_b"], params["bhh_b"])[::-1]
    last = jnp.concatenate([hs_f[-1], hs_b[-1]], axis=1)   # lstm_out[-1]
    y = last @ params["wout"].T + params["bout"]
    return jax.nn.log_softmax(y, axis=-1)


def init_params(key, vocab_size, embedding_dim, hidden_dim, label_size):
    ks = jax.random.split(key, 11)
    s = 0.1
    H, E, L, V = hidden_dim, embedding_dim, label_size, vocab_size
    return {
        "embedding": s * jax.random.normal(ks[0], (V, E), jnp.float32),
        "wih_f": s * jax.random.normal(ks[1], (4 * H, E), jnp.float32),
        "whh_f": s * jax.random.normal(ks[2], (4 * H, H), jnp.float32),
        "bih_f": s * jax.random.normal(ks[3], (4 * H,), jnp.float32),
        "bhh_f": s * jax.random.normal(ks[4], (4 * H,), jnp.float32),
        "wih_b": s * jax.random.normal(ks[5], (4 * H, E), jnp.float32),
        "whh_b": s * jax.random.normal(ks[6], (4 * H, H), jnp.float32),
        "bih_b": s * jax.random.normal(ks[7], (4 * H,), jnp.float32),
        "bhh_b": s * jax.random.normal(ks[8], (4 * H,), jnp.float32),
        "wout": s * jax.random.normal(ks[9], (L, 2 * H), jnp.float32),
        "bout": s * jax.random.normal(ks[10], (L,), jnp.float32),
    }


if __name__ == "__main__":
    # Small shapes consistent with the module: seq=8, batch=4, emb=32,
    # hidden=32, vocab=100, labels=4.
    SEQ, BATCH, EMB, HID, VOCAB, LABELS = 8, 4, 32, 32, 100, 4

    key = jax.random.PRNGKey(0)
    pkey, skey = jax.random.split(key)
    params = init_params(pkey, VOCAB, EMB, HID, LABELS)
    sentence = jax.random.randint(skey, (SEQ, BATCH), 0, VOCAB, dtype=jnp.int32)

    fwd = jax.jit(functools.partial(bilstm_sentiment_forward, params=params))
    log_probs = fwd(sentence)
    jax.block_until_ready(log_probs)

    ref = _ref_forward(sentence, params)
    assert log_probs.shape == (BATCH, LABELS)
    assert jnp.all(jnp.isfinite(log_probs))
    assert jnp.allclose(log_probs, ref, atol=1e-4, rtol=1e-4), (
        "mismatch vs pure-JAX reference")

    print("KERNEL_OK")
</pallas_src>

<mosaic_0001>
module attributes {stable_mosaic.version = 11 : i64} {
  func.func @bilstm_kernel(%arg0: memref<64x32xf32, #tpu.memory_space<vmem>>, %arg1: memref<32x256xf32, #tpu.memory_space<vmem>>, %arg2: memref<1x256xf32, #tpu.memory_space<vmem>>, %arg3: memref<32x128xf32, #tpu.memory_space<vmem>>, %arg4: memref<64x4xf32, #tpu.memory_space<vmem>>, %arg5: memref<1x4xf32, #tpu.memory_space<vmem>>, %arg6: memref<8x4xf32, #tpu.memory_space<vmem>>) attributes {dimension_semantics = [], scalar_prefetch = 0 : i64, scratch_operands = 0 : i64, tpu.core_type = #tpu.core_type<tc>} {
    %0 = tpu.iota {dimensions = array<i32: 1>} : vector<8x128xi32>
    %c64_i32 = arith.constant 64 : i32
    %1 = vector.broadcast %c64_i32 : i32 to vector<8x128xi32>
    %2 = arith.cmpi sge, %0, %1 : vector<8x128xi32>
    %c96_i32 = arith.constant 96 : i32
    %3 = vector.broadcast %c96_i32 : i32 to vector<8x128xi32>
    %4 = arith.cmpi slt, %0, %3 : vector<8x128xi32>
    %5 = arith.andi %2, %4 : vector<8x128xi1>
    %cst = arith.constant 1.000000e+00 : f32
    %cst_0 = arith.constant 5.000000e-01 : f32
    %6 = vector.broadcast %cst : f32 to vector<8x128xf32>
    %7 = vector.broadcast %cst_0 : f32 to vector<8x128xf32>
    %8 = arith.select %5, %6, %7 : vector<8x128xi1>, vector<8x128xf32>
    %cst_1 = arith.constant 0.000000e+00 : f32
    %cst_2 = arith.constant 5.000000e-01 : f32
    %9 = vector.broadcast %cst_1 : f32 to vector<8x128xf32>
    %10 = vector.broadcast %cst_2 : f32 to vector<8x128xf32>
    %11 = arith.select %5, %9, %10 : vector<8x128xi1>, vector<8x128xf32>
    %c0 = arith.constant 0 : index
    %c0_3 = arith.constant 0 : index
    %12 = vector.load %arg0[%c0, %c0_3] : memref<64x32xf32, #tpu.memory_space<vmem>>, vector<64x32xf32>
    %c0_4 = arith.constant 0 : index
    %c0_5 = arith.constant 0 : index
    %13 = vector.load %arg1[%c0_4, %c0_5] : memref<32x256xf32, #tpu.memory_space<vmem>>, vector<32x256xf32>
    %cst_6 = arith.constant dense<0.000000e+00> : vector<64x256xf32>
    %14 = tpu.matmul %12, %13, %cst_6 {dimension_numbers = #tpu.dot_dimension_numbers<[1], [0], [0], [1], [0, 0, 1, 1], [], []>} : vector<64x32xf32>, vector<32x256xf32>, vector<64x256xf32> -> vector<64x256xf32>
    %c0_7 = arith.constant 0 : index
    %c0_8 = arith.constant 0 : index
    %15 = vector.load %arg2[%c0_7, %c0_8] : memref<1x256xf32, #tpu.memory_space<vmem>>, vector<1x256xf32>
    %16 = vector.broadcast %15 : vector<1x256xf32> to vector<64x256xf32>
    %17 = arith.addf %14, %16 : vector<64x256xf32>
    %c0_9 = arith.constant 0 : index
    %c0_10 = arith.constant 0 : index
    %18 = vector.load %arg3[%c0_9, %c0_10] : memref<32x128xf32, #tpu.memory_space<vmem>>, vector<32x128xf32>
    %19 = vector.extract_strided_slice %17 {offsets = [0, 0], sizes = [8, 128], strides = [1, 1]} : vector<64x256xf32> to vector<8x128xf32>
    %20 = arith.mulf %19, %8 : vector<8x128xf32>
    %21 = math.tanh %20 : vector<8x128xf32>
    %22 = arith.mulf %21, %8 : vector<8x128xf32>
    %23 = arith.addf %22, %11 : vector<8x128xf32>
    %24 = vector.extract_strided_slice %23 {offsets = [0, 0], sizes = [8, 32], strides = [1, 1]} : vector<8x128xf32> to vector<8x32xf32>
    %25 = vector.extract_strided_slice %23 {offsets = [0, 64], sizes = [8, 32], strides = [1, 1]} : vector<8x128xf32> to vector<8x32xf32>
    %26 = vector.extract_strided_slice %23 {offsets = [0, 96], sizes = [8, 32], strides = [1, 1]} : vector<8x128xf32> to vector<8x32xf32>
    %27 = arith.mulf %24, %25 : vector<8x32xf32>
    %28 = math.tanh %27 : vector<8x32xf32>
    %29 = arith.mulf %26, %28 : vector<8x32xf32>
    %30 = vector.extract_strided_slice %17 {offsets = [8, 0], sizes = [8, 128], strides = [1, 1]} : vector<64x256xf32> to vector<8x128xf32>
    %cst_11 = arith.constant dense<0.000000e+00> : vector<8x128xf32>
    %31 = tpu.matmul %29, %18, %cst_11 {dimension_numbers = #tpu.dot_dimension_numbers<[1], [0], [0], [1], [0, 0, 1, 1], [], []>} : vector<8x32xf32>, vector<32x128xf32>, vector<8x128xf32> -> vector<8x128xf32>
    %32 = arith.addf %30, %31 : vector<8x128xf32>
    %33 = arith.mulf %32, %8 : vector<8x128xf32>
    %34 = math.tanh %33 : vector<8x128xf32>
    %35 = arith.mulf %34, %8 : vector<8x128xf32>
    %36 = arith.addf %35, %11 : vector<8x128xf32>
    %37 = vector.extract_strided_slice %36 {offsets = [0, 0], sizes = [8, 32], strides = [1, 1]} : vector<8x128xf32> to vector<8x32xf32>
    %38 = vector.extract_strided_slice %36 {offsets = [0, 32], sizes = [8, 32], strides = [1, 1]} : vector<8x128xf32> to vector<8x32xf32>
    %39 = vector.extract_strided_slice %36 {offsets = [0, 64], sizes = [8, 32], strides = [1, 1]} : vector<8x128xf32> to vector<8x32xf32>
    %40 = vector.extract_strided_slice %36 {offsets = [0, 96], sizes = [8, 32], strides = [1, 1]} : vector<8x128xf32> to vector<8x32xf32>
    %41 = arith.mulf %38, %27 : vector<8x32xf32>
    %42 = arith.mulf %37, %39 : vector<8x32xf32>
    %43 = arith.addf %41, %42 : vector<8x32xf32>
    %44 = math.tanh %43 : vector<8x32xf32>
    %45 = arith.mulf %40, %44 : vector<8x32xf32>
    %46 = vector.extract_strided_slice %17 {offsets = [16, 0], sizes = [8, 128], strides = [1, 1]} : vector<64x256xf32> to vector<8x128xf32>
    %cst_12 = arith.constant dense<0.000000e+00> : vector<8x128xf32>
    %47 = tpu.matmul %45, %18, %cst_12 {dimension_numbers = #tpu.dot_dimension_numbers<[1], [0], [0], [1], [0, 0, 1, 1], [], []>} : vector<8x32xf32>, vector<32x128xf32>, vector<8x128xf32> -> vector<8x128xf32>
    %48 = arith.addf %46, %47 : vector<8x128xf32>
    %49 = arith.mulf %48, %8 : vector<8x128xf32>
    %50 = math.tanh %49 : vector<8x128xf32>
    %51 = arith.mulf %50, %8 : vector<8x128xf32>
    %52 = arith.addf %51, %11 : vector<8x128xf32>
    %53 = vector.extract_strided_slice %52 {offsets = [0, 0], sizes = [8, 32], strides = [1, 1]} : vector<8x128xf32> to vector<8x32xf32>
    %54 = vector.extract_strided_slice %52 {offsets = [0, 32], sizes = [8, 32], strides = [1, 1]} : vector<8x128xf32> to vector<8x32xf32>
    %55 = vector.extract_strided_slice %52 {offsets = [0, 64], sizes = [8, 32], strides = [1, 1]} : vector<8x128xf32> to vector<8x32xf32>
    %56 = vector.extract_strided_slice %52 {offsets = [0, 96], sizes = [8, 32], strides = [1, 1]} : vector<8x128xf32> to vector<8x32xf32>
    %57 = arith.mulf %54, %43 : vector<8x32xf32>
    %58 = arith.mulf %53, %55 : vector<8x32xf32>
    %59 = arith.addf %57, %58 : vector<8x32xf32>
    %60 = math.tanh %59 : vector<8x32xf32>
    %61 = arith.mulf %56, %60 : vector<8x32xf32>
    %62 = vector.extract_strided_slice %17 {offsets = [24, 0], sizes = [8, 128], strides = [1, 1]} : vector<64x256xf32> to vector<8x128xf32>
    %cst_13 = arith.constant dense<0.000000e+00> : vector<8x128xf32>
    %63 = tpu.matmul %61, %18, %cst_13 {dimension_numbers = #tpu.dot_dimension_numbers<[1], [0], [0], [1], [0, 0, 1, 1], [], []>} : vector<8x32xf32>, vector<32x128xf32>, vector<8x128xf32> -> vector<8x128xf32>
    %64 = arith.addf %62, %63 : vector<8x128xf32>
    %65 = arith.mulf %64, %8 : vector<8x128xf32>
    %66 = math.tanh %65 : vector<8x128xf32>
    %67 = arith.mulf %66, %8 : vector<8x128xf32>
    %68 = arith.addf %67, %11 : vector<8x128xf32>
    %69 = vector.extract_strided_slice %68 {offsets = [0, 0], sizes = [8, 32], strides = [1, 1]} : vector<8x128xf32> to vector<8x32xf32>
    %70 = vector.extract_strided_slice %68 {offsets = [0, 32], sizes = [8, 32], strides = [1, 1]} : vector<8x128xf32> to vector<8x32xf32>
    %71 = vector.extract_strided_slice %68 {offsets = [0, 64], sizes = [8, 32], strides = [1, 1]} : vector<8x128xf32> to vector<8x32xf32>
    %72 = vector.extract_strided_slice %68 {offsets = [0, 96], sizes = [8, 32], strides = [1, 1]} : vector<8x128xf32> to vector<8x32xf32>
    %73 = arith.mulf %70, %59 : vector<8x32xf32>
    %74 = arith.mulf %69, %71 : vector<8x32xf32>
    %75 = arith.addf %73, %74 : vector<8x32xf32>
    %76 = math.tanh %75 : vector<8x32xf32>
    %77 = arith.mulf %72, %76 : vector<8x32xf32>
    %78 = vector.extract_strided_slice %17 {offsets = [32, 0], sizes = [8, 128], strides = [1, 1]} : vector<64x256xf32> to vector<8x128xf32>
    %cst_14 = arith.constant dense<0.000000e+00> : vector<8x128xf32>
    %79 = tpu.matmul %77, %18, %cst_14 {dimension_numbers = #tpu.dot_dimension_numbers<[1], [0], [0], [1], [0, 0, 1, 1], [], []>} : vector<8x32xf32>, vector<32x128xf32>, vector<8x128xf32> -> vector<8x128xf32>
    %80 = arith.addf %78, %79 : vector<8x128xf32>
    %81 = arith.mulf %80, %8 : vector<8x128xf32>
    %82 = math.tanh %81 : vector<8x128xf32>
    %83 = arith.mulf %82, %8 : vector<8x128xf32>
    %84 = arith.addf %83, %11 : vector<8x128xf32>
    %85 = vector.extract_strided_slice %84 {offsets = [0, 0], sizes = [8, 32], strides = [1, 1]} : vector<8x128xf32> to vector<8x32xf32>
    %86 = vector.extract_strided_slice %84 {offsets = [0, 32], sizes = [8, 32], strides = [1, 1]} : vector<8x128xf32> to vector<8x32xf32>
    %87 = vector.extract_strided_slice %84 {offsets = [0, 64], sizes = [8, 32], strides = [1, 1]} : vector<8x128xf32> to vector<8x32xf32>
    %88 = vector.extract_strided_slice %84 {offsets = [0, 96], sizes = [8, 32], strides = [1, 1]} : vector<8x128xf32> to vector<8x32xf32>
    %89 = arith.mulf %86, %75 : vector<8x32xf32>
    %90 = arith.mulf %85, %87 : vector<8x32xf32>
    %91 = arith.addf %89, %90 : vector<8x32xf32>
    %92 = math.tanh %91 : vector<8x32xf32>
    %93 = arith.mulf %88, %92 : vector<8x32xf32>
    %94 = vector.extract_strided_slice %17 {offsets = [40, 0], sizes = [8, 128], strides = [1, 1]} : vector<64x256xf32> to vector<8x128xf32>
    %cst_15 = arith.constant dense<0.000000e+00> : vector<8x128xf32>
    %95 = tpu.matmul %93, %18, %cst_15 {dimension_numbers = #tpu.dot_dimension_numbers<[1], [0], [0], [1], [0, 0, 1, 1], [], []>} : vector<8x32xf32>, vector<32x128xf32>, vector<8x128xf32> -> vector<8x128xf32>
    %96 = arith.addf %94, %95 : vector<8x128xf32>
    %97 = arith.mulf %96, %8 : vector<8x128xf32>
    %98 = math.tanh %97 : vector<8x128xf32>
    %99 = arith.mulf %98, %8 : vector<8x128xf32>
    %100 = arith.addf %99, %11 : vector<8x128xf32>
    %101 = vector.extract_strided_slice %100 {offsets = [0, 0], sizes = [8, 32], strides = [1, 1]} : vector<8x128xf32> to vector<8x32xf32>
    %102 = vector.extract_strided_slice %100 {offsets = [0, 32], sizes = [8, 32], strides = [1, 1]} : vector<8x128xf32> to vector<8x32xf32>
    %103 = vector.extract_strided_slice %100 {offsets = [0, 64], sizes = [8, 32], strides = [1, 1]} : vector<8x128xf32> to vector<8x32xf32>
    %104 = vector.extract_strided_slice %100 {offsets = [0, 96], sizes = [8, 32], strides = [1, 1]} : vector<8x128xf32> to vector<8x32xf32>
    %105 = arith.mulf %102, %91 : vector<8x32xf32>
    %106 = arith.mulf %101, %103 : vector<8x32xf32>
    %107 = arith.addf %105, %106 : vector<8x32xf32>
    %108 = math.tanh %107 : vector<8x32xf32>
    %109 = arith.mulf %104, %108 : vector<8x32xf32>
    %110 = vector.extract_strided_slice %17 {offsets = [48, 0], sizes = [8, 128], strides = [1, 1]} : vector<64x256xf32> to vector<8x128xf32>
    %cst_16 = arith.constant dense<0.000000e+00> : vector<8x128xf32>
    %111 = tpu.matmul %109, %18, %cst_16 {dimension_numbers = #tpu.dot_dimension_numbers<[1], [0], [0], [1], [0, 0, 1, 1], [], []>} : vector<8x32xf32>, vector<32x128xf32>, vector<8x128xf32> -> vector<8x128xf32>
    %112 = arith.addf %110, %111 : vector<8x128xf32>
    %113 = arith.mulf %112, %8 : vector<8x128xf32>
    %114 = math.tanh %113 : vector<8x128xf32>
    %115 = arith.mulf %114, %8 : vector<8x128xf32>
    %116 = arith.addf %115, %11 : vector<8x128xf32>
    %117 = vector.extract_strided_slice %116 {offsets = [0, 0], sizes = [8, 32], strides = [1, 1]} : vector<8x128xf32> to vector<8x32xf32>
    %118 = vector.extract_strided_slice %116 {offsets = [0, 32], sizes = [8, 32], strides = [1, 1]} : vector<8x128xf32> to vector<8x32xf32>
    %119 = vector.extract_strided_slice %116 {offsets = [0, 64], sizes = [8, 32], strides = [1, 1]} : vector<8x128xf32> to vector<8x32xf32>
    %120 = vector.extract_strided_slice %116 {offsets = [0, 96], sizes = [8, 32], strides = [1, 1]} : vector<8x128xf32> to vector<8x32xf32>
    %121 = arith.mulf %118, %107 : vector<8x32xf32>
    %122 = arith.mulf %117, %119 : vector<8x32xf32>
    %123 = arith.addf %121, %122 : vector<8x32xf32>
    %124 = math.tanh %123 : vector<8x32xf32>
    %125 = arith.mulf %120, %124 : vector<8x32xf32>
    %126 = vector.extract_strided_slice %17 {offsets = [56, 0], sizes = [8, 128], strides = [1, 1]} : vector<64x256xf32> to vector<8x128xf32>
    %cst_17 = arith.constant dense<0.000000e+00> : vector<8x128xf32>
    %127 = tpu.matmul %125, %18, %cst_17 {dimension_numbers = #tpu.dot_dimension_numbers<[1], [0], [0], [1], [0, 0, 1, 1], [], []>} : vector<8x32xf32>, vector<32x128xf32>, vector<8x128xf32> -> vector<8x128xf32>
    %128 = arith.addf %126, %127 : vector<8x128xf32>
    %129 = arith.mulf %128, %8 : vector<8x128xf32>
    %130 = math.tanh %129 : vector<8x128xf32>
    %131 = arith.mulf %130, %8 : vector<8x128xf32>
    %132 = arith.addf %131, %11 : vector<8x128xf32>
    %133 = vector.extract_strided_slice %132 {offsets = [0, 0], sizes = [8, 32], strides = [1, 1]} : vector<8x128xf32> to vector<8x32xf32>
    %134 = vector.extract_strided_slice %132 {offsets = [0, 32], sizes = [8, 32], strides = [1, 1]} : vector<8x128xf32> to vector<8x32xf32>
    %135 = vector.extract_strided_slice %132 {offsets = [0, 64], sizes = [8, 32], strides = [1, 1]} : vector<8x128xf32> to vector<8x32xf32>
    %136 = vector.extract_strided_slice %132 {offsets = [0, 96], sizes = [8, 32], strides = [1, 1]} : vector<8x128xf32> to vector<8x32xf32>
    %137 = arith.mulf %134, %123 : vector<8x32xf32>
    %138 = arith.mulf %133, %135 : vector<8x32xf32>
    %139 = arith.addf %137, %138 : vector<8x32xf32>
    %140 = math.tanh %139 : vector<8x32xf32>
    %141 = arith.mulf %136, %140 : vector<8x32xf32>
    %142 = vector.extract_strided_slice %17 {offsets = [56, 128], sizes = [8, 128], strides = [1, 1]} : vector<64x256xf32> to vector<8x128xf32>
    %143 = arith.mulf %142, %8 : vector<8x128xf32>
    %144 = math.tanh %143 : vector<8x128xf32>
    %145 = arith.mulf %144, %8 : vector<8x128xf32>
    %146 = arith.addf %145, %11 : vector<8x128xf32>
    %147 = vector.extract_strided_slice %146 {offsets = [0, 0], sizes = [8, 32], strides = [1, 1]} : vector<8x128xf32> to vector<8x32xf32>
    %148 = vector.extract_strided_slice %146 {offsets = [0, 64], sizes = [8, 32], strides = [1, 1]} : vector<8x128xf32> to vector<8x32xf32>
    %149 = arith.mulf %147, %148 : vector<8x32xf32>
    %150 = vector.extract_strided_slice %146 {offsets = [0, 96], sizes = [8, 32], strides = [1, 1]} : vector<8x128xf32> to vector<8x32xf32>
    %151 = math.tanh %149 : vector<8x32xf32>
    %152 = arith.mulf %150, %151 : vector<8x32xf32>
    %153 = tpu.concatenate %141, %152 in 1 : vector<8x32xf32>, vector<8x32xf32> -> vector<8x64xf32>
    %c0_18 = arith.constant 0 : index
    %c0_19 = arith.constant 0 : index
    %154 = vector.load %arg4[%c0_18, %c0_19] : memref<64x4xf32, #tpu.memory_space<vmem>>, vector<64x4xf32>
    %cst_20 = arith.constant dense<0.000000e+00> : vector<8x4xf32>
    %155 = tpu.matmul %153, %154, %cst_20 {dimension_numbers = #tpu.dot_dimension_numbers<[1], [0], [0], [1], [0, 0, 1, 1], [], []>} : vector<8x64xf32>, vector<64x4xf32>, vector<8x4xf32> -> vector<8x4xf32>
    %c0_21 = arith.constant 0 : index
    %c0_22 = arith.constant 0 : index
    %156 = vector.load %arg5[%c0_21, %c0_22] : memref<1x4xf32, #tpu.memory_space<vmem>>, vector<1x4xf32>
    %157 = vector.broadcast %156 : vector<1x4xf32> to vector<8x4xf32>
    %158 = arith.addf %155, %157 : vector<8x4xf32>
    %cst_23 = arith.constant dense<0xFF800000> : vector<8xf32>
    %159 = vector.multi_reduction <maximumf>, %158, %cst_23 [1] : vector<8x4xf32> to vector<8xf32>
    %160 = vector.shape_cast %159 : vector<8xf32> to vector<8x1xf32>
    %161 = vector.broadcast %160 : vector<8x1xf32> to vector<8x4xf32>
    %162 = arith.subf %158, %161 : vector<8x4xf32>
    %163 = math.exp %162 : vector<8x4xf32>
    %cst_24 = arith.constant dense<0.000000e+00> : vector<8xf32>
    %164 = vector.multi_reduction <add>, %163, %cst_24 [1] : vector<8x4xf32> to vector<8xf32>
    %165 = vector.shape_cast %164 : vector<8xf32> to vector<8x1xf32>
    %166 = math.log %165 : vector<8x1xf32>
    %167 = arith.addf %166, %160 : vector<8x1xf32>
    %168 = vector.broadcast %167 : vector<8x1xf32> to vector<8x4xf32>
    %169 = arith.subf %158, %168 : vector<8x4xf32>
    %c0_25 = arith.constant 0 : index
    %c0_26 = arith.constant 0 : index
    %170 = vector.load %arg6[%c0_25, %c0_26] : memref<8x4xf32, #tpu.memory_space<vmem>>, vector<8x4xf32>
    tpu.vector_store %arg6[%c0_25, %c0_26], %169 {strides = array<i32>} : memref<8x4xf32, #tpu.memory_space<vmem>>, vector<8x4xf32>,
    return
  }
}

</mosaic_0001>

<bundles_post_ra>
// kernel: bilstm_sentiment_forward.1
= control target key start
LH: loop header
LB: loop body
LE: loop exit
PB: predicated region body
PF: predicated region fallthrough
CT: control target
= control target key end

     0   :  { %v1301_v3 = vmov 0.0   ;;  %vm58_vm0 = vcmask 261120   ;;  %v23_v14 = vlaneseq  ;;  %v1302_v20 = vmov 0.5   ;;  %s1307_s26 = smov 32   ;;  %s1599_s1 = inlined_call_operand.vmem [shape: f32[32,256], index: 1, kind: input, shape index: {}]   ;;  %s1600_s0 = inlined_call_operand.vmem [shape: f32[64,32], index: 0, kind: input, shape index: {}]   ;;  %s1601_s2 = inlined_call_operand.vmem [shape: f32[1,256], index: 2, kind: input, shape index: {}]   ;;  %s1602_s3 = inlined_call_operand.vmem [shape: f32[32,128], index: 3, kind: input, shape index: {}]   ;;  %s1603_s4 = inlined_call_operand.vmem [shape: f32[64,4], index: 4, kind: input, shape index: {}]   ;;  %s1604_s5 = inlined_call_operand.vmem [shape: f32[1,4], index: 5, kind: input, shape index: {}]   ;;  %s1605_s6 = inlined_call_operand.vmem [shape: f32[8,4], index: 6, kind: output, shape index: {}]  }
   0x1   :  { %v39_v0 = vld [vmem:[%s1599_s1 + $0x8] sm:$0xff]  ;;  %v41_v1 = vld [vmem:[%s1599_s1 + $0x18] sm:$0xff]  ;;  %v38_v2 = vld [vmem:[%s1599_s1] sm:$0xff]  ;;  %147 = vmatprep.mubr.f32.mxu1 %v1301_v3  ;;  %v1304_v33 = vmov 0.0|0.0   ;;  %vm1305_vm4 = vmmov 0   ;;  %vm930_vm5 = vcmask 523264  }
   0x2   :  { %v1180_v4 = vpack.c.bf16 %v41_v1, %v39_v0  ;;  %v40_v5 = vld [vmem:[%s1599_s1 + $0x10] sm:$0xff]  ;;  %v43_v6 = vld [vmem:[%s1599_s1 + $0x28] sm:$0xff]  ;;  %v45_v7 = vld [vmem:[%s1599_s1 + $0x38] sm:$0xff]  ;;  %v1373_v15 = vshrl.u32 %v23_v14, 7  ;;  %v24_v16 = vand.u32 127, %v23_v14  ;;  %1188 = vmatprep.subr.bf16.mxu0 %v1304_v33  ;;  %1092 = vmatprep.mubr.msk.f32.mxu0 %vm1305_vm4, %v1301_v3  ;;  %vm1004_vm6 = vcmask 31744  }
   0x3   :  { %v1182_v8 = vpack.c.bf16 %v40_v5, %v38_v2  ;;  %v1184_v9 = vpack.c.bf16 %v45_v7, %v43_v6  ;;  %v42_v10 = vld [vmem:[%s1599_s1 + $0x20] sm:$0xff]  ;;  %v44_v11 = vld [vmem:[%s1599_s1 + $0x30] sm:$0xff]  ;;  %v31_v32 = vld [vmem:[%s1600_s0 + $0x8] sm:$0xff] }
   0x4   :  { %1181 = vmatprep.subr.bf16.mxu1 %v1180_v4  ;;  %v1186_v12 = vpack.c.bf16 %v44_v11, %v42_v10  ;;  %v30_v13 = vld [vmem:[%s1600_s0] sm:$0xff]  ;;  %v50_v17 = vsub.s32 0, %v1373_v15  ;;  %vm25_vm1 = vcmp.ge.s32.totalorder %v24_v16, 64  ;;  %vm26_vm2 = vcmp.lt.s32.totalorder %v24_v16, 96  ;;  %v190_v35 = vld [vmem:[%s1602_s3 + $0x8] sm:$0xff]  ;;  %v191_v36 = vld [vmem:[%s1602_s3 + $0x10] sm:$0xff] }
   0x5   :  { %1183 = vmatpush1.bf16.msra.mxu1 %v1182_v8  ;;  %v1379_v18 = vld [vmem:[%s1601_s2] sm:$0x3]  ;;  %vm27_vm3 = vmand %vm25_vm1, %vm26_vm2  ;;  %s1303_s2 = smov 64   ;;  %v192_v38 = vld [vmem:[%s1602_s3 + $0x18] sm:$0xff] }
   0x6   :  { %1185 = vmatprep.subr.bf16.mxu1 %v1184_v9  ;;  %v1382_v19 = vrot.slane %v1379_v18, %v50_v17  ;;  %v1384_v21 = vsel %vm27_vm3, 1.0, %v1302_v20  ;;  %v1388_v27 = vsel %vm27_vm3, 0.0, %v1302_v20  ;;  %v189_v34 = vld [vmem:[%s1602_s3] sm:$0xff]  ;;  %v1417_v39 = vpack.c.bf16 %v192_v38, %v191_v36  ;;  %s1306_s3 = smov 96   ;;  %v32_v60 = vld [vmem:[%s1600_s0 + $0x10] sm:$0xff]  ;;  %v33_v20 = vld [vmem:[%s1600_s0 + $0x18] sm:$0xff] }
   0x7   :  { %v1407_v37 = vpack.c.bf16 %v190_v35, %v189_v34 }
   0x9   :  { %1187 = vmatpush1.bf16.msra.mxu1 %v1186_v12  ;;  %1190 = vmatpush3.bf16.msra.mxu0 %v1407_v37 }
   0xa   :  { %1224 = vmatprep.subr.bf16.mxu1 %v1304_v33  ;;  %1191 = vmatprep.subr.bf16.mxu0 %v1304_v33 }
   0xc   :  { %1023 = vmatmul.mubr.msk.f32.vlgmr.msra.gmra.mrb[0].mxu1 %vm58_vm0, %v30_v13 }
   0xd   :  { %152 = vmatprep.mubr.f32.mxu1 %v1301_v3  ;;  %1226 = vmatpush3.bf16.msra.mxu1 %v1407_v37 }
   0xe   :  { %1227 = vmatprep.subr.bf16.mxu1 %v1304_v33  ;;  %1193 = vmatpush3.bf16.msra.mxu0 %v1417_v39 }
   0xf   :  { %1194 = vmatprep.subr.bf16.mxu0 %v1304_v33 }
  0x10   :  { %1024 = vmatmul.mubr.msk.f32.gmra.mrb[2].mxu1 %vm58_vm0, %v31_v32 }
  0x11   :  { %157 = vmatprep.mubr.f32.mxu1 %v1301_v3  ;;  %1229 = vmatpush3.bf16.msra.mxu1 %v1417_v39 }
  0x12   :  { %1230 = vmatprep.subr.bf16.mxu1 %v1304_v33 }
  0x14   :  { %1025 = vmatmul.mubr.msk.f32.gmra.mrb[4].mxu1 %vm58_vm0, %v32_v60 }
  0x15   :  { %162 = vmatprep.mubr.f32.mxu1 %v1301_v3 }
  0x18   :  { %1026 = vmatmul.mubr.msk.f32.gmra.mrb[6].mxu1 %vm58_vm0, %v33_v20 }
  0x19   :  { %167 = vmatprep.mubr.f32.mxu1 %v1301_v3 }
  0xdf   :  { %v149_v22 = vpop.f32.mrb[0].mxu1 }
  0xe0   :  { %v150_v23 = vadd.f32 %v149_v22, %v1382_v19  ;;  %v151_v24 = vpop.f32.mrb[1].mxu1 }
  0xe2   :  { %v193_v25 = vmul.f32 %v150_v23, %v1384_v21 }
  0xe3   :  { %v154_v43 = vpop.f32.mrb[2].mxu1 }
  0xe4   :  { %1261 = vtanh.f32 %v193_v25  ;;  %v156_v44 = vpop.f32.mrb[3].mxu1  ;;  %v155_v46 = vadd.f32 %v154_v43, %v1382_v19 }
  0xe7   :  { %v159_v0 = vpop.f32.mrb[4].mxu1 }
  0xe8   :  { %v161_v1 = vpop.f32.mrb[5].mxu1  ;;  %v160_v4 = vadd.f32 %v159_v0, %v1382_v19 }
  0xe9   :  { %v35_v1 = vld [vmem:[%s1600_s0 + $0x28] sm:$0xff] }
  0xeb   :  { %v164_v25 = vpop.f32.mrb[6].mxu1 }
  0xee   :  { %v1262_v26 = vpop.eup %1261 }
  0xef   :  { %v195_v28 = vmul.f32 %v1262_v26, %v1384_v21  ;;  %v166_v26 = vpop.f32.mrb[7].mxu1 }
  0xf1   :  { %v196_v29 = vadd.f32 %v195_v28, %v1388_v27 }
  0xf3   :  { %198 = vrot.lane.b32.xlu0 %v196_v29, %s1303_s2 }
 0x165   :  { %v199_v30 = vpop.permute.xlu0 %198 }
 0x166   :  { %v201_v31 = vmul.f32 %v199_v30, %v196_v29 }
 0x168   :  { %1263 = vtanh.f32 %v201_v31 }
 0x172   :  { %v1264_v40 = vpop.eup %1263 }
 0x173   :  { %204 = vrot.lane.b32.xlu0 %v1264_v40, %s1306_s3 }
 0x177   :  { %289 = vrot.lane.b32.xlu0 %v201_v31, %s1307_s26 }
 0x1e5   :  { %v205_v41 = vpop.permute.xlu0 %204 }
 0x1e6   :  { %v207_v42 = vmul.f32 %v205_v41, %v196_v29  ;;  %v165_v29 = vadd.f32 %v164_v25, %v1382_v19 }
 0x1e8   :  { %209 = vrot.lane.b32.xlu1 %v207_v42, %s1307_s26 }
 0x1e9   :  { %v290_v56 = vpop.permute.xlu0 %289 }
 0x25a   :  { %v210_v45 = vpop.permute.xlu1 %209 }
 0x25b   :  { %1093 = vmatmul.mubr.msk.f32.vlgmr.msra.gmra.mrb[0].mxu0 %vm58_vm0, %v210_v45  ;;  %v34_v45 = vld [vmem:[%s1600_s0 + $0x20] sm:$0xff] }
 0x25c   :  { %1196 = vmatpush3.bf16.msra.mxu0 %v1407_v37  ;;  %1103 = vmatprep.mubr.msk.f32.mxu0 %vm1305_vm4, %v1301_v3 }
 0x25d   :  { %1197 = vmatprep.subr.bf16.mxu0 %v1304_v33  ;;  %1027 = vmatmul.mubr.msk.f32.gmra.mrb[8].mxu1 %vm58_vm0, %v34_v45 }
 0x25e   :  { %172 = vmatprep.mubr.f32.mxu1 %v1301_v3 }
 0x260   :  { %1199 = vmatpush3.bf16.msra.mxu0 %v1417_v39 }
 0x261   :  { %1200 = vmatprep.subr.bf16.mxu0 %v1304_v33  ;;  %1028 = vmatmul.mubr.msk.f32.gmra.mrb[10].mxu1 %vm58_vm0, %v35_v1 }
 0x262   :  { %177 = vmatprep.mubr.f32.mxu1 %v1301_v3 }
 0x32e   :  { %v279_v47 = vpop.f32.mrb[0].mxu0 }
 0x32f   :  { %v283_v48 = vadd.f32 %v279_v47, %v155_v46  ;;  %v1094_v49 = vpop.f32.mrb[1].mxu0 }
 0x330   :  { %v169_v49 = vpop.f32.mrb[8].mxu1 }
 0x331   :  { %v284_v50 = vmul.f32 %v283_v48, %v1384_v21 }
 0x333   :  { %1265 = vtanh.f32 %v284_v50  ;;  %v171_v50 = vpop.f32.mrb[9].mxu1 }
 0x33d   :  { %v1266_v51 = vpop.eup %1265 }
 0x33e   :  { %v286_v52 = vmul.f32 %v1266_v51, %v1384_v21 }
 0x340   :  { %v287_v53 = vadd.f32 %v286_v52, %v1388_v27  ;;  %v170_v52 = vadd.f32 %v169_v49, %v1382_v19 }
 0x342   :  { %294 = vrot.lane.b32.xlu1 %v287_v53, %s1303_s2  ;;  %v292_v57 = vmul.f32 %v290_v56, %v287_v53 }
 0x3b4   :  { %v295_v54 = vpop.permute.xlu1 %294 }
 0x3b5   :  { %v297_v55 = vmul.f32 %v295_v54, %v287_v53 }
 0x3b7   :  { %299 = vrot.lane.b32.xlu1 %v297_v55, %s1307_s26 }
 0x429   :  { %v300_v58 = vpop.permute.xlu1 %299 }
 0x42a   :  { %v302_v59 = vadd.f32 %v300_v58, %v292_v57 }
 0x42c   :  { %1267 = vtanh.f32 %v302_v59 }
 0x436   :  { %v1268_v61 = vpop.eup %1267 }
 0x437   :  { %305 = vrot.lane.b32.xlu0 %v1268_v61, %s1303_s2 }
 0x4a9   :  { %v306_v62 = vpop.permute.xlu0 %305 }
 0x4aa   :  { %v308_v63 = vmul.f32 %v306_v62, %v287_v53 }
 0x4ac   :  { %310 = vrot.lane.b32.xlu1 %v308_v63, %s1307_s26 }
 0x51e   :  { %v311_v2 = vpop.permute.xlu1 %310 }
 0x51f   :  { %1104 = vmatmul.mubr.msk.f32.vlgmr.msra.gmra.mrb[2].mxu0 %vm58_vm0, %v311_v2 }
 0x520   :  { %1202 = vmatpush3.bf16.msra.mxu0 %v1407_v37  ;;  %1114 = vmatprep.mubr.msk.f32.mxu0 %vm1305_vm4, %v1301_v3 }
 0x521   :  { %1203 = vmatprep.subr.bf16.mxu0 %v1304_v33 }
 0x524   :  { %1205 = vmatpush3.bf16.msra.mxu0 %v1417_v39 }
 0x525   :  { %1206 = vmatprep.subr.bf16.mxu0 %v1304_v33 }
 0x5f2   :  { %v380_v5 = vpop.f32.mrb[2].mxu0 }
 0x5f3   :  { %v384_v6 = vadd.f32 %v380_v5, %v160_v4  ;;  %v1105_v7 = vpop.f32.mrb[3].mxu0 }
 0x5f5   :  { %v385_v8 = vmul.f32 %v384_v6, %v1384_v21  ;;  %v174_v6 = vpop.f32.mrb[10].mxu1 }
 0x5f6   :  { %v176_v7 = vpop.f32.mrb[11].mxu1 }
 0x5f7   :  { %1269 = vtanh.f32 %v385_v8 }
 0x601   :  { %v1270_v9 = vpop.eup %1269 }
 0x602   :  { %v387_v10 = vmul.f32 %v1270_v9, %v1384_v21  ;;  %v175_v9 = vadd.f32 %v174_v6, %v1382_v19 }
 0x604   :  { %v388_v11 = vadd.f32 %v387_v10, %v1388_v27 }
 0x606   :  { %391 = vrot.lane.b32.xlu0 %v388_v11, %s1303_s2  ;;  %v389_v14 = vmul.f32 %v388_v11, %v302_v59 }
 0x678   :  { %v392_v12 = vpop.permute.xlu0 %391 }
 0x679   :  { %v394_v13 = vmul.f32 %v392_v12, %v388_v11 }
 0x67b   :  { %396 = vrot.lane.b32.xlu1 %v394_v13, %s1307_s26 }
 0x6ed   :  { %v397_v16 = vpop.permute.xlu1 %396 }
 0x6ee   :  { %v399_v17 = vadd.f32 %v397_v16, %v389_v14 }
 0x6f0   :  { %1271 = vtanh.f32 %v399_v17 }
 0x6fa   :  { %v1272_v22 = vpop.eup %1271 }
 0x6fb   :  { %402 = vrot.lane.b32.xlu0 %v1272_v22, %s1303_s2 }
 0x76d   :  { %v403_v23 = vpop.permute.xlu0 %402 }
 0x76e   :  { %v405_v24 = vmul.f32 %v403_v23, %v388_v11 }
 0x770   :  { %407 = vrot.lane.b32.xlu1 %v405_v24, %s1307_s26  ;;  %v36_v24 = vld [vmem:[%s1600_s0 + $0x30] sm:$0xff] }
 0x771   :  { %1029 = vmatmul.mubr.msk.f32.gmra.mrb[12].mxu1 %vm58_vm0, %v36_v24 }
 0x772   :  { %182 = vmatprep.mubr.f32.mxu1 %v1301_v3 }
 0x7e2   :  { %v408_v28 = vpop.permute.xlu1 %407 }
 0x7e3   :  { %1115 = vmatmul.mubr.msk.f32.vlgmr.msra.gmra.mrb[4].mxu0 %vm58_vm0, %v408_v28 }
 0x7e4   :  { %1208 = vmatpush3.bf16.msra.mxu0 %v1407_v37  ;;  %1125 = vmatprep.mubr.msk.f32.mxu0 %vm1305_vm4, %v1301_v3 }
 0x7e5   :  { %1209 = vmatprep.subr.bf16.mxu0 %v1304_v33 }
 0x7e8   :  { %1211 = vmatpush3.bf16.msra.mxu0 %v1417_v39 }
 0x7e9   :  { %1212 = vmatprep.subr.bf16.mxu0 %v1304_v33 }
 0x8b6   :  { %v477_v30 = vpop.f32.mrb[4].mxu0 }
 0x8b7   :  { %v481_v31 = vadd.f32 %v477_v30, %v165_v29  ;;  %v1116_v32 = vpop.f32.mrb[5].mxu0  ;;  %v179_v29 = vpop.f32.mrb[12].mxu1 }
 0x8b8   :  { %v181_v30 = vpop.f32.mrb[13].mxu1  ;;  %v180_v32 = vadd.f32 %v179_v29, %v1382_v19 }
 0x8b9   :  { %v482_v34 = vmul.f32 %v481_v31, %v1384_v21 }
 0x8bb   :  { %1273 = vtanh.f32 %v482_v34 }
 0x8c5   :  { %v1274_v35 = vpop.eup %1273 }
 0x8c6   :  { %v484_v36 = vmul.f32 %v1274_v35, %v1384_v21 }
 0x8c8   :  { %v485_v38 = vadd.f32 %v484_v36, %v1388_v27 }
 0x8ca   :  { %488 = vrot.lane.b32.xlu0 %v485_v38, %s1303_s2  ;;  %v486_v42 = vmul.f32 %v485_v38, %v399_v17 }
 0x93c   :  { %v489_v40 = vpop.permute.xlu0 %488 }
 0x93d   :  { %v491_v41 = vmul.f32 %v489_v40, %v485_v38 }
 0x93f   :  { %493 = vrot.lane.b32.xlu1 %v491_v41, %s1307_s26 }
 0x9b1   :  { %v494_v43 = vpop.permute.xlu1 %493 }
 0x9b2   :  { %v496_v44 = vadd.f32 %v494_v43, %v486_v42 }
 0x9b4   :  { %1275 = vtanh.f32 %v496_v44 }
 0x9be   :  { %v1276_v46 = vpop.eup %1275 }
 0x9bf   :  { %499 = vrot.lane.b32.xlu0 %v1276_v46, %s1303_s2 }
 0xa31   :  { %v500_v47 = vpop.permute.xlu0 %499 }
 0xa32   :  { %v502_v48 = vmul.f32 %v500_v47, %v485_v38 }
 0xa34   :  { %504 = vrot.lane.b32.xlu1 %v502_v48, %s1307_s26  ;;  %v37_v48 = vld [vmem:[%s1600_s0 + $0x38] sm:$0xff] }
 0xa35   :  { %1030 = vmatmul.mubr.msk.f32.gmra.mrb[14].mxu1 %vm58_vm0, %v37_v48 }
 0xa36   :  { %1158 = vmatprep.mubr.msk.f32.mxu1 %vm1305_vm4, %v1301_v3 }
 0xaa6   :  { %v505_v51 = vpop.permute.xlu1 %504 }
 0xaa7   :  { %1126 = vmatmul.mubr.msk.f32.vlgmr.msra.gmra.mrb[6].mxu0 %vm58_vm0, %v505_v51 }
 0xaa8   :  { %1214 = vmatpush3.bf16.msra.mxu0 %v1407_v37  ;;  %1136 = vmatprep.mubr.msk.f32.mxu0 %vm1305_vm4, %v1301_v3 }
 0xaa9   :  { %1215 = vmatprep.subr.bf16.mxu0 %v1304_v33 }
 0xaac   :  { %1217 = vmatpush3.bf16.msra.mxu0 %v1417_v39 }
 0xaad   :  { %1218 = vmatprep.subr.bf16.mxu0 %v1304_v33 }
 0xb7a   :  { %v574_v53 = vpop.f32.mrb[6].mxu0 }
 0xb7b   :  { %v578_v54 = vadd.f32 %v574_v53, %v170_v52  ;;  %v1127_v55 = vpop.f32.mrb[7].mxu0  ;;  %v184_v52 = vpop.f32.mrb[14].mxu1 }
 0xb7c   :  { %v186_v53 = vpop.f32.mrb[15].mxu1  ;;  %v54_v55 = vsub.s32 1, %v1373_v15 }
 0xb7d   :  { %v579_v56 = vmul.f32 %v578_v54, %v1384_v21 }
 0xb7f   :  { %1277 = vtanh.f32 %v579_v56  ;;  %v55_v56 = vrot.slane %v1379_v18, %v54_v55 }
 0xb89   :  { %v1278_v57 = vpop.eup %1277 }
 0xb8a   :  { %v581_v58 = vmul.f32 %v1278_v57, %v1384_v21  ;;  %v187_v57 = vadd.f32 %v186_v53, %v55_v56 }
 0xb8c   :  { %v582_v59 = vadd.f32 %v581_v58, %v1388_v27  ;;  %v185_v58 = vadd.f32 %v184_v52, %v1382_v19 }
 0xb8e   :  { %585 = vrot.lane.b32.xlu0 %v582_v59, %s1303_s2  ;;  %v583_v62 = vmul.f32 %v582_v59, %v496_v44 }
 0xc00   :  { %v586_v60 = vpop.permute.xlu0 %585 }
 0xc01   :  { %v588_v61 = vmul.f32 %v586_v60, %v582_v59 }
 0xc03   :  { %590 = vrot.lane.b32.xlu1 %v588_v61, %s1307_s26 }
 0xc75   :  { %v591_v63 = vpop.permute.xlu1 %590 }
 0xc76   :  { %v593_v0 = vadd.f32 %v591_v63, %v583_v62 }
 0xc78   :  { %1279 = vtanh.f32 %v593_v0 }
 0xc82   :  { %v1280_v2 = vpop.eup %1279 }
 0xc83   :  { %596 = vrot.lane.b32.xlu0 %v1280_v2, %s1303_s2 }
 0xcf5   :  { %v597_v4 = vpop.permute.xlu0 %596 }
 0xcf6   :  { %v599_v5 = vmul.f32 %v597_v4, %v582_v59  ;;  %v891_v59 = vmul.f32 %v187_v57, %v1384_v21 }
 0xcf8   :  { %601 = vrot.lane.b32.xlu1 %v599_v5, %s1307_s26 }
 0xd6a   :  { %v602_v8 = vpop.permute.xlu1 %601 }
 0xd6b   :  { %1137 = vmatmul.mubr.msk.f32.vlgmr.msra.gmra.mrb[8].mxu0 %vm58_vm0, %v602_v8 }
 0xd6c   :  { %1220 = vmatpush3.bf16.msra.mxu0 %v1407_v37  ;;  %1147 = vmatprep.mubr.msk.f32.mxu0 %vm1305_vm4, %v1301_v3 }
 0xd6d   :  { %1221 = vmatprep.subr.bf16.mxu0 %v1304_v33 }
 0xd70   :  { %1223 = vmatpush3.bf16.msra.mxu0 %v1417_v39 }
 0xe3e   :  { %v671_v10 = vpop.f32.mrb[8].mxu0 }
 0xe3f   :  { %v675_v11 = vadd.f32 %v671_v10, %v175_v9  ;;  %v1138_v12 = vpop.f32.mrb[9].mxu0 }
 0xe41   :  { %v676_v13 = vmul.f32 %v675_v11, %v1384_v21  ;;  %v917_v11 = vld [vmem:[%s1603_s4 + $0x10] sm:$0xff] }
 0xe43   :  { %1281 = vtanh.f32 %v676_v13  ;;  %v918_v13 = vld [vmem:[%s1603_s4 + $0x18] sm:$0xff] }
 0xe4d   :  { %v1282_v14 = vpop.eup %1281 }
 0xe4e   :  { %v678_v16 = vmul.f32 %v1282_v14, %v1384_v21  ;;  %v1234_v14 = vpack.c.bf16 %v918_v13, %v917_v11 }
 0xe50   :  { %v679_v37 = vadd.f32 %v678_v16, %v1388_v27  ;;  %v919_v16 = vld [vmem:[%s1603_s4 + $0x20] sm:$0xff] }
 0xe52   :  { %682 = vrot.lane.b32.xlu0 %v679_v37, %s1303_s2  ;;  %v680_v39 = vmul.f32 %v679_v37, %v593_v0 }
 0xec4   :  { %v683_v17 = vpop.permute.xlu0 %682 }
 0xec5   :  { %v685_v20 = vmul.f32 %v683_v17, %v679_v37 }
 0xec7   :  { %687 = vrot.lane.b32.xlu1 %v685_v20, %s1307_s26 }
 0xf39   :  { %v688_v22 = vpop.permute.xlu1 %687 }
 0xf3a   :  { %v690_v23 = vadd.f32 %v688_v22, %v680_v39  ;;  %v921_v39 = vld [vmem:[%s1603_s4 + $0x30] sm:$0xff]  ;;  %v922_v22 = vld [vmem:[%s1603_s4 + $0x38] sm:$0xff] }
 0xf3c   :  { %1283 = vtanh.f32 %v690_v23 }
 0xf46   :  { %v1284_v25 = vpop.eup %1283 }
 0xf47   :  { %693 = vrot.lane.b32.xlu0 %v1284_v25, %s1303_s2  ;;  %v1240_v25 = vpack.c.bf16 %v922_v22, %v921_v39 }
 0xfb9   :  { %v694_v26 = vpop.permute.xlu0 %693 }
 0xfba   :  { %v696_v28 = vmul.f32 %v694_v26, %v679_v37  ;;  %v920_v37 = vld [vmem:[%s1603_s4 + $0x28] sm:$0xff] }
 0xfbb   :  { %v1237_v17 = vpack.c.bf16 %v920_v37, %v919_v16 }
 0xfbc   :  { %698 = vrot.lane.b32.xlu1 %v696_v28, %s1307_s26 }
0x102e   :  { %v699_v31 = vpop.permute.xlu1 %698 }
0x102f   :  { %1148 = vmatmul.mubr.msk.f32.vlgmr.msra.gmra.mrb[10].mxu0 %vm58_vm0, %v699_v31 }
0x1102   :  { %v768_v34 = vpop.f32.mrb[10].mxu0 }
0x1103   :  { %v772_v35 = vadd.f32 %v768_v34, %v180_v32  ;;  %v1149_v36 = vpop.f32.mrb[11].mxu0  ;;  %v1038_v32 = vld [vmem:[%s1604_s5] ss:$0 sm:$0xff] }
0x1105   :  { %v773_v38 = vmul.f32 %v772_v35, %v1384_v21 }
0x1107   :  { %1285 = vtanh.f32 %v773_v38 }
0x1111   :  { %v1286_v40 = vpop.eup %1285 }
0x1112   :  { %v775_v41 = vmul.f32 %v1286_v40, %v1384_v21 }
0x1114   :  { %v776_v42 = vadd.f32 %v775_v41, %v1388_v27 }
0x1116   :  { %779 = vrot.lane.b32.xlu0 %v776_v42, %s1303_s2  ;;  %v777_v45 = vmul.f32 %v776_v42, %v690_v23 }
0x1188   :  { %v780_v43 = vpop.permute.xlu0 %779 }
0x1189   :  { %v782_v44 = vmul.f32 %v780_v43, %v776_v42 }
0x118b   :  { %784 = vrot.lane.b32.xlu1 %v782_v44, %s1307_s26 }
0x11fd   :  { %v785_v46 = vpop.permute.xlu1 %784 }
0x11fe   :  { %v787_v47 = vadd.f32 %v785_v46, %v777_v45 }
0x1200   :  { %1287 = vtanh.f32 %v787_v47 }
0x1201   :  { %1289 = vtanh.f32 %v891_v59 }
0x120a   :  { %v1288_v49 = vpop.eup %1287 }
0x120b   :  { %790 = vrot.lane.b32.xlu0 %v1288_v49, %s1303_s2  ;;  %v1290_v0 = vpop.eup %1289 }
0x120c   :  { %v893_v18 = vmul.f32 %v1290_v0, %v1384_v21 }
0x120e   :  { %v894_v19 = vadd.f32 %v893_v18, %v1388_v27 }
0x127d   :  { %v791_v50 = vpop.permute.xlu0 %790 }
0x127e   :  { %v793_v51 = vmul.f32 %v791_v50, %v776_v42 }
0x1280   :  { %795 = vrot.lane.b32.xlu1 %v793_v51, %s1307_s26 }
0x12f2   :  { %v796_v54 = vpop.permute.xlu1 %795 }
0x12f3   :  { %1159 = vmatmul.mubr.msk.f32.vlgmr.msra.gmra.mrb[16].mxu1 %vm58_vm0, %v796_v54 }
0x12f4   :  { %1177 = vmatprep.mubr.msk.f32.mxu1 %vm1305_vm4, %v1301_v3 }
0x13c6   :  { %v865_v60 = vpop.f32.mrb[16].mxu1 }
0x13c7   :  { %v869_v61 = vadd.f32 %v865_v60, %v185_v58  ;;  %v1160_v62 = vpop.f32.mrb[17].mxu1 }
0x13c9   :  { %v870_v63 = vmul.f32 %v869_v61, %v1384_v21 }
0x13cb   :  { %1291 = vtanh.f32 %v870_v63 }
0x13d5   :  { %v1292_v1 = vpop.eup %1291 }
0x13d6   :  { %v872_v3 = vmul.f32 %v1292_v1, %v1384_v21  ;;  %v915_v21 = vld [vmem:[%s1603_s4] sm:$0xff] }
0x13d8   :  { %v873_v15 = vadd.f32 %v872_v3, %v1388_v27  ;;  %v916_v27 = vld [vmem:[%s1603_s4 + $0x8] sm:$0xff] }
0x13d9   :  { %v1231_v12 = vpack.c.bf16 %v916_v27, %v915_v21 }
0x13da   :  { %876 = vrot.lane.b32.xlu0 %v873_v15, %s1303_s2  ;;  %v874_v8 = vmul.f32 %v873_v15, %v787_v47 }
0x13db   :  { %1232 = vmatpush3.bf16.msra.mxu1 %v1231_v12 }
0x13dc   :  { %1233 = vmatprep.subr.bf16.mxu1 %v1304_v33 }
0x13de   :  { %896 = vrot.lane.b32.xlu0 %v894_v19, %s1303_s2 }
0x13df   :  { %1235 = vmatpush3.bf16.msra.mxu1 %v1234_v14 }
0x13e0   :  { %1236 = vmatprep.subr.bf16.mxu1 %v1304_v33 }
0x13e3   :  { %1238 = vmatpush3.bf16.msra.mxu1 %v1237_v17 }
0x13e4   :  { %1239 = vmatprep.subr.bf16.mxu1 %v1304_v33 }
0x13e7   :  { %1241 = vmatpush3.bf16.msra.mxu1 %v1240_v25 }
0x144c   :  { %v877_v2 = vpop.permute.xlu0 %876 }
0x144d   :  { %v879_v4 = vmul.f32 %v877_v2, %v873_v15 }
0x144f   :  { %881 = vrot.lane.b32.xlu1 %v879_v4, %s1307_s26 }
0x1450   :  { %v897_v5 = vpop.permute.xlu0 %896 }
0x1451   :  { %v899_v6 = vmul.f32 %v897_v5, %v894_v19 }
0x1453   :  { %1293 = vtanh.f32 %v899_v6 }
0x145d   :  { %v1294_v7 = vpop.eup %1293 }
0x145e   :  { %902 = vrot.lane.b32.xlu0 %v1294_v7, %s1306_s3 }
0x14c1   :  { %v882_v9 = vpop.permute.xlu1 %881 }
0x14c2   :  { %v884_v10 = vadd.f32 %v882_v9, %v874_v8 }
0x14c4   :  { %1295 = vtanh.f32 %v884_v10 }
0x14ce   :  { %v1296_v20 = vpop.eup %1295 }
0x14cf   :  { %887 = vrot.lane.b32.xlu1 %v1296_v20, %s1303_s2 }
0x14d0   :  { %v903_v23 = vpop.permute.xlu0 %902 }
0x14d1   :  { %v905_v24 = vmul.f32 %v903_v23, %v894_v19 }
0x14d3   :  { %911 = vrot.lane.b32.xlu0 %v905_v24, %s1303_s2 }
0x1541   :  { %v888_v26 = vpop.permute.xlu1 %887 }
0x1542   :  { %v890_v28 = vmul.f32 %v888_v26, %v873_v15 }
0x1544   :  { %907 = vrot.lane.b32.xlu1 %v890_v28, %s1307_s26 }
0x1545   :  { %v912_v29 = vpop.permute.xlu0 %911 }
0x15b6   :  { %v908_v30 = vpop.permute.xlu1 %907 }
0x15b7   :  { %v914_v31 = vsel %vm58_vm0, %v908_v30, %v912_v29 }
0x15b8   :  { %1178 = vmatmul.mubr.msk.f32.vlgmr.msra.gmra.mrb[18].mxu1 %vm930_vm5, %v914_v31 }
0x168b   :  { %v1000_v34 = vpop.f32.mrb[18].mxu1 }
0x168c   :  { %v1001_v33 = vadd.f32 %v1038_v32, %v1000_v34  ;;  %v1179_v35 = vpop.f32.mrb[19].mxu1 }
0x168e   :  { %v1005_v36 = vsel %vm1004_vm6, %v1001_v33, -inf }
0x168f   :  { %1006 = vmax.xlane.f32.xlu1 %v1005_v36 }
0x171c   :  { %v1007_v38 = vpop.xlane.xlu1 %1006 }
0x171d   :  { %v1008_v40 = vsub.f32 %v1001_v33, %v1007_v38 }
0x171f   :  { %v1009_v41 = vmul.f32 1.442695, %v1008_v40 }
0x1721   :  { %1297 = vpow2.f32 %v1009_v41 }
0x172b   :  { %v1298_v42 = vpop.eup %1297 }
0x172c   :  { %v1011_v43 = vsel %vm1004_vm6, %v1298_v42, 0.0 }
0x172d   :  { %1012 = vadd.xlane.f32.xlu0 %v1011_v43 }
0x17ba   :  { %v1013_v44 = vpop.xlane.xlu0 %1012 }
0x17bb   :  { %1299 = vlog2.f32 %v1013_v44 }
0x17c5   :  { %v1300_v45 = vpop.eup %1299 }
0x17c6   :  { %v1015_v46 = vmul.f32 0.6931472, %v1300_v45 }
0x17c8   :  { %v1016_v47 = vadd.f32 %v1015_v46, %v1007_v38 }
0x17ca   :  { %v1017_v48 = vsub.f32 %v1001_v33, %v1016_v47 }
0x17cc   :  { %1018 = vst.msk [vmem:[%s1605_s6] sm:$0xff] %vm1004_vm6, %v1017_v48 }

</bundles_post_ra>
